<compile_context>
chip_gen: v5e
topology: v5e:2x2
jax: 0.10.0
libtpu: 0.0.40
codegen_flags: <defaults>
</compile_context>

<pallas_src>
import math

import jax
import jax.numpy as jnp
from jax.experimental import pallas as pl
from jax.experimental.pallas import tpu as pltpu


def _round_up(x: int, m: int) -> int:
    return ((x + m - 1) // m) * m


def _sin_layer_kernel(x_ref, w_ref, b_ref, o_ref, acc_ref):
    k = pl.program_id(2)

    @pl.when(k == 0)
    def _():
        acc_ref[...] = jnp.zeros_like(acc_ref)

    # Elementwise sin in f32 (EUP), then feed the MXU in the weight's dtype so
    # bf16 weights keep full MXU throughput; accumulation stays f32.
    s = jnp.sin(x_ref[...].astype(jnp.float32)).astype(w_ref.dtype)
    acc_ref[...] += jnp.dot(s, w_ref[...], preferred_element_type=jnp.float32)

    @pl.when(k == pl.num_programs(2) - 1)
    def _():
        o_ref[...] = (acc_ref[...] + b_ref[...].astype(jnp.float32)).astype(o_ref.dtype)


def sin_layer(x, weight, bias, *, tm_max=256, tn_max=256, tk_max=512):
    """y = bias + sin(x) @ weight  (x: (B, K), weight: (K, N), bias: (1, N))."""
    batch, in_features = x.shape
    k_w, out_features = weight.shape
    assert k_w == in_features
    assert bias.shape == (1, out_features)
    out_dtype = x.dtype

    # Tile sizes: lane dims (N, K) multiples of 128, sublane dim (M) multiple
    # of 8, clamped to the (padded) problem size.
    tm = min(tm_max, _round_up(batch, 8))
    tn = min(tn_max, _round_up(out_features, 128))
    tk = min(tk_max, _round_up(in_features, 128))

    pm = _round_up(batch, tm)
    pn = _round_up(out_features, tn)
    pk = _round_up(in_features, tk)

    # Zero-pad to tile multiples. Zero-padded K rows of the weight contribute
    # exactly 0, so the reduction stays correct; padded M/N rows/cols are
    # sliced off below.
    if (pm, pk) != (batch, in_features):
        x = jnp.pad(x, ((0, pm - batch), (0, pk - in_features)))
    if (pk, pn) != (in_features, out_features):
        weight = jnp.pad(weight, ((0, pk - in_features), (0, pn - out_features)))
    if pn != out_features:
        bias = jnp.pad(bias, ((0, 0), (0, pn - out_features)))

    grid = (pm // tm, pn // tn, pk // tk)

    # TODO(synk): for very large N/K, sin(x) for a given (i, k) tile is
    # recomputed N//tn times; it could be cached in a per-K-tile VMEM scratch
    # if the layer ever becomes EUP/VALU bound.
    out = pl.pallas_call(
        _sin_layer_kernel,
        out_shape=jax.ShapeDtypeStruct((pm, pn), out_dtype),
        grid_spec=pltpu.PrefetchScalarGridSpec(
            num_scalar_prefetch=0,
            grid=grid,
            in_specs=[
                pl.BlockSpec((tm, tk), lambda i, j, k: (i, k)),
                pl.BlockSpec((tk, tn), lambda i, j, k: (k, j)),
                pl.BlockSpec((1, tn), lambda i, j, k: (0, j)),
            ],
            out_specs=pl.BlockSpec((tm, tn), lambda i, j, k: (i, j)),
            scratch_shapes=[pltpu.VMEM((tm, tn), jnp.float32)],
        ),
        compiler_params=pltpu.CompilerParams(
            dimension_semantics=("parallel", "parallel", "arbitrary"),
            vmem_limit_bytes=48 * 1024 * 1024,
        ),
    )(x, weight, bias)

    if (pm, pn) != (batch, out_features):
        out = out[:batch, :out_features]
    return out


def init_sin_layer_params(key, in_features, out_features, dtype=jnp.float32):
    # nn.init.xavier_uniform_ on (in_features, out_features):
    bound = math.sqrt(6.0 / (in_features + out_features))
    w = jax.random.uniform(key, (in_features, out_features),
                           minval=-bound, maxval=bound, dtype=dtype)
    # nn.init.constant_(bias, 0)
    b = jnp.zeros((1, out_features), dtype=dtype)
    return w, b


if __name__ == "__main__":
    key = jax.random.PRNGKey(0)
    k_x1, k_w1, k_x2, k_w2 = jax.random.split(key, 4)

    # --- small shape, single-tile grid (matches the module's toy layer) ---
    batch, in_features, out_features = 8, 32, 64
    x = jax.random.normal(k_x1, (batch, in_features), dtype=jnp.float32)
    weight, bias = init_sin_layer_params(k_w1, in_features, out_features)

    y = sin_layer(x, weight, bias)
    jax.block_until_ready(y)
    y_ref = bias + jnp.dot(jnp.sin(x), weight, precision=jax.lax.Precision.HIGHEST)
    assert y.shape == (batch, out_features)
    assert jnp.allclose(y, y_ref, atol=5e-3, rtol=5e-3)

    # --- medium shape exercising a (2, 2, 2) grid: tiled K accumulation,
    #     epilogue bias add, and M/N/K zero-padding ---
    batch2, in2, out2 = 300, 640, 384
    x2 = jax.random.normal(k_x2, (batch2, in2), dtype=jnp.float32)
    w2, b2 = init_sin_layer_params(k_w2, in2, out2)
    b2 = b2 + 0.5  # non-zero bias so the epilogue add is actually tested

    y2 = sin_layer(x2, w2, b2)
    jax.block_until_ready(y2)
    y2_ref = b2 + jnp.dot(jnp.sin(x2), w2, precision=jax.lax.Precision.HIGHEST)
    assert y2.shape == (batch2, out2)
    assert jnp.allclose(y2, y2_ref, atol=5e-3, rtol=5e-3)

    print("KERNEL_OK")
</pallas_src>

<mosaic_0001>
module attributes {stable_mosaic.version = 11 : i64} {
  func.func @_sin_layer_kernel(%arg0: i32, %arg1: i32, %arg2: i32, %arg3: memref<8x128xf32, #tpu.memory_space<vmem>>, %arg4: memref<128x128xf32, #tpu.memory_space<vmem>>, %arg5: memref<1x128xf32, #tpu.memory_space<vmem>>, %arg6: memref<8x128xf32, #tpu.memory_space<vmem>>, %arg7: memref<8x128xf32, #tpu.memory_space<vmem>>) attributes {dimension_semantics = [#tpu.dimension_semantics<parallel>, #tpu.dimension_semantics<parallel>, #tpu.dimension_semantics<arbitrary>], iteration_bounds = array<i64: 1, 1, 1>, scalar_prefetch = 0 : i64, scratch_operands = 1 : i64, tpu.core_type = #tpu.core_type<tc>, window_params = [{transform_indices = @transform_0, window_bounds = array<i64: 8, 128>}, {transform_indices = @transform_1, window_bounds = array<i64: 128, 128>}, {transform_indices = @transform_2, window_bounds = array<i64: 1, 128>}, {transform_indices = @transform_3, window_bounds = array<i64: 8, 128>}]} {
    %c0_i32 = arith.constant 0 : i32
    %0 = arith.cmpi eq, %arg2, %c0_i32 : i32
    %1 = arith.extui %0 : i1 to i32
    %c0_i32_0 = arith.constant 0 : i32
    %2 = arith.cmpi ne, %1, %c0_i32_0 : i32
    scf.if %2 {
      %cst_10 = arith.constant 0.000000e+00 : f32
      %13 = vector.broadcast %cst_10 : f32 to vector<8x128xf32>
      %c0_11 = arith.constant 0 : index
      %c0_12 = arith.constant 0 : index
      %14 = vector.load %arg7[%c0_11, %c0_12] : memref<8x128xf32, #tpu.memory_space<vmem>>, vector<8x128xf32>
      tpu.vector_store %arg7[%c0_11, %c0_12], %13 {strides = array<i32>} : memref<8x128xf32, #tpu.memory_space<vmem>>, vector<8x128xf32>,
    } else {
    }
    %c0 = arith.constant 0 : index
    %c0_1 = arith.constant 0 : index
    %3 = vector.load %arg3[%c0, %c0_1] : memref<8x128xf32, #tpu.memory_space<vmem>>, vector<8x128xf32>
    %4 = math.sin %3 : vector<8x128xf32>
    %c0_2 = arith.constant 0 : index
    %c0_3 = arith.constant 0 : index
    %5 = vector.load %arg7[%c0_2, %c0_3] : memref<8x128xf32, #tpu.memory_space<vmem>>, vector<8x128xf32>
    %c0_4 = arith.constant 0 : index
    %c0_5 = arith.constant 0 : index
    %6 = vector.load %arg4[%c0_4, %c0_5] : memref<128x128xf32, #tpu.memory_space<vmem>>, vector<128x128xf32>
    %cst = arith.constant dense<0.000000e+00> : vector<8x128xf32>
    %7 = tpu.matmul %4, %6, %cst {dimension_numbers = #tpu.dot_dimension_numbers<[1], [0], [0], [1], [0, 0, 1, 1], [], []>} : vector<8x128xf32>, vector<128x128xf32>, vector<8x128xf32> -> vector<8x128xf32>
    %8 = arith.addf %5, %7 : vector<8x128xf32>
    %c0_6 = arith.constant 0 : index
    %c0_7 = arith.constant 0 : index
    %9 = vector.load %arg7[%c0_6, %c0_7] : memref<8x128xf32, #tpu.memory_space<vmem>>, vector<8x128xf32>
    tpu.vector_store %arg7[%c0_6, %c0_7], %8 {strides = array<i32>} : memref<8x128xf32, #tpu.memory_space<vmem>>, vector<8x128xf32>,
    %c0_i32_8 = arith.constant 0 : i32
    %10 = arith.cmpi eq, %arg2, %c0_i32_8 : i32
    %11 = arith.extui %10 : i1 to i32
    %c0_i32_9 = arith.constant 0 : i32
    %12 = arith.cmpi ne, %11, %c0_i32_9 : i32
    scf.if %12 {
      %c0_10 = arith.constant 0 : index
      %c0_11 = arith.constant 0 : index
      %13 = vector.load %arg7[%c0_10, %c0_11] : memref<8x128xf32, #tpu.memory_space<vmem>>, vector<8x128xf32>
      %c0_12 = arith.constant 0 : index
      %c0_13 = arith.constant 0 : index
      %14 = vector.load %arg5[%c0_12, %c0_13] : memref<1x128xf32, #tpu.memory_space<vmem>>, vector<1x128xf32>
      %15 = vector.broadcast %14 : vector<1x128xf32> to vector<8x128xf32>
      %16 = arith.addf %13, %15 : vector<8x128xf32>
      %c0_14 = arith.constant 0 : index
      %c0_15 = arith.constant 0 : index
      %17 = vector.load %arg6[%c0_14, %c0_15] : memref<8x128xf32, #tpu.memory_space<vmem>>, vector<8x128xf32>
      tpu.vector_store %arg6[%c0_14, %c0_15], %16 {strides = array<i32>} : memref<8x128xf32, #tpu.memory_space<vmem>>, vector<8x128xf32>,
    } else {
    }
    return
  }
  func.func @transform_0(%arg0: i32, %arg1: i32, %arg2: i32) -> (i32, i32) {
    %c0_i32 = arith.constant 0 : i32
    return %arg0, %arg2 : i32, i32
  }
  func.func @transform_1(%arg0: i32, %arg1: i32, %arg2: i32) -> (i32, i32) {
    %c0_i32 = arith.constant 0 : i32
    return %arg2, %arg1 : i32, i32
  }
  func.func @transform_2(%arg0: i32, %arg1: i32, %arg2: i32) -> (i32, i32) {
    %c0_i32 = arith.constant 0 : i32
    %c0_i32_0 = arith.constant 0 : i32
    return %c0_i32, %arg1 : i32, i32
  }
  func.func @transform_3(%arg0: i32, %arg1: i32, %arg2: i32) -> (i32, i32) {
    %c0_i32 = arith.constant 0 : i32
    return %arg0, %arg1 : i32, i32
  }
}

</mosaic_0001>

<bundles_post_ra>
// kernel: tpu_custom_call.1
= control target key start
LH: loop header
LB: loop body
LE: loop exit
PB: predicated region body
PF: predicated region fallthrough
CT: control target
= control target key end

     0   :  { %8 = vsyncpa [#allocation4], 0  ;;  %s457_s0 = inlined_call_operand.hbm [shape: f32[8,128], index: 0, kind: input, shape index: {}]   ;;  %s458_s1 = inlined_call_operand.hbm [shape: f32[128,128], index: 1, kind: input, shape index: {}]   ;;  %s459_s2 = inlined_call_operand.vmem [shape: f32[1,128], index: 2, kind: input, shape index: {}]   ;;  %s460_s3 = inlined_call_operand.hbm [shape: f32[8,128], index: 3, kind: output, shape index: {}]  }
   0x1   :  { %9 = vsyncpa [#allocation7], 0 }
   0x2   :  { %10 = vsyncpa [#allocation5], 0  ;;  %s16_s14 = sshll.u32 %s457_s0, 4  ;;  %s367_s15 = smov [#allocation3]   ;;  %s17_s14 = int_to_ptr.hbm [resolvable:$true] %s16_s14 }
   0x3   :  { %s18_s16 = sshll.u32 %s367_s15, 4  ;;  %s26_s19 = sshll.u32 %s458_s1, 4  ;;  %s19_s16 = int_to_ptr.vmem [resolvable:$true] %s18_s16  ;;  %s27_s19 = int_to_ptr.hbm [resolvable:$true] %s26_s19 }
   0x4   :  { %21 = dma.hbm_to_vmem [thread:$0]  %s17_s14, 128, %s19_s16, [#allocation4]  }
   0x5   :  { %s368_s20 = smov [#allocation6]   ;;  %s369_s22 = smov 128  }
   0x6   :  { %s28_s21 = sshll.u32 %s368_s20, 4  ;;  %s370_s23 = smov 8   ;;  %s29_s21 = int_to_ptr.vmem [resolvable:$true] %s28_s21 }
   0x7   :  { %34 = dma.hbm_to_vmem [thread:$0]  %s27_s19, 2048, %s29_s21, [#allocation7], %s369_s22, %s369_s22, %s370_s23  }
   0x8   :  { %361 = dma.done.wait [#allocation4], 128  }
   0x9   :  { %362 = vsyncadd [#allocation4], 4294967168 }
   0xa   :  { %363 = dma.done.wait [#allocation7], 2048  }
   0xb   :  { %364 = vsyncadd [#allocation7], 4294965248  ;;  %v222_v0 = vld [vmem:[#allocation6 + $0x78] sm:$0xff]  ;;  %v221_v1 = vld [vmem:[#allocation6 + $0x70] sm:$0xff]  ;;  %v371_v23 = vmov 683565275  }
   0xc   :  { %223 = vmatpush.msra.mxu0 %v222_v0  ;;  %v220_v2 = vld [vmem:[#allocation6 + $0x68] sm:$0xff]  ;;  %v219_v3 = vld [vmem:[#allocation6 + $0x60] sm:$0xff]  ;;  %v405_v4 = vld [vmem:[#allocation3] sm:$0xff]  ;;  %v372_v25 = vmov 2475754826   ;;  %s378_s24 = smov [#allocation8]  }
   0xd   :  { %v218_v5 = vld [vmem:[#allocation6 + $0x58] sm:$0xff]  ;;  %v54_v6 = vand.u32 2139095040, %v405_v4  ;;  %v217_v7 = vld [vmem:[#allocation6 + $0x50] sm:$0xff]  ;;  %v51_v9 = vand.u32 2147483647, %v405_v4  ;;  %v216_v10 = vld [vmem:[#allocation6 + $0x48] sm:$0xff] }
   0xe   :  { %224 = vmatpush.msra.mxu0 %v221_v1  ;;  %v215_v12 = vld [vmem:[#allocation6 + $0x40] sm:$0xff]  ;;  %v214_v15 = vld [vmem:[#allocation6 + $0x38] sm:$0xff]  ;;  %v213_v17 = vld [vmem:[#allocation6 + $0x30] sm:$0xff]  ;;  %v373_v27 = vmov 2131351028   ;;  %vm53_vm12 = vcmp.lt.s32.totalorder %v405_v4, 0 }
   0xf   :  { %v55_v8 = vshrl.u32 %v54_v6, 23  ;;  %v58_v14 = vand.u32 8388607, %v51_v9  ;;  %v212_v21 = vld [vmem:[#allocation6 + $0x28] sm:$0xff]  ;;  %v374_v29 = vmov 2102212464  }
  0x10   :  { %225 = vmatpush.msra.mxu0 %v220_v2  ;;  %v375_v31 = vmov 920167782   ;;  %v211_v33 = vld [vmem:[#allocation6 + $0x20] sm:$0xff]  ;;  %v376_v38 = vmov 1326507024   ;;  %v210_v41 = vld [vmem:[#allocation6 + $0x18] sm:$0xff] }
  0x11   :  { %v273_v11 = vadd.s32 4294967169, %v55_v8  ;;  %v59_v19 = vor.u32 8388608, %v58_v14  ;;  %v209_v47 = vld [vmem:[#allocation6 + $0x10] sm:$0xff]  ;;  %v208_v52 = vld [vmem:[#allocation6 + $0x8] sm:$0xff]  ;;  %v207_v59 = vld [vmem:[#allocation6] sm:$0xff]  ;;  %s260_s25 = sshll.u32 %s378_s24, 4  ;;  %s261_s25 = int_to_ptr.vmem [resolvable:$true] %s260_s25 }
  0x12   :  { %226 = vmatpush.msra.mxu0 %v219_v3  ;;  %vm52_vm13 = vcmp.le.f32.partialorder %v51_v9, 0.7853982  ;;  %s262_s28 = sshll.u32 %s460_s3, 4  ;;  %s263_s28 = int_to_ptr.hbm [resolvable:$true] %s262_s28 }
  0x13   :  { %v61_v13 = vadd.s32 1, %v273_v11  ;;  %v414_v40 = vshll.u32 %v59_v19, 8 }
  0x14   :  { %227 = vmatpush.msra.mxu0 %v218_v5 }
  0x15   :  { %vm62_vm0 = vcmp.gt.s32.totalorder %v61_v13, 0  ;;  %v100_v55 = vand.u32 65535, %v414_v40  ;;  %v101_v56 = vshrl.u32 %v414_v40, 16 }
  0x16   :  { %228 = vmatpush.msra.mxu0 %v217_v7  ;;  %v63_v16 = vsel %vm62_vm0, %v61_v13, 0 }
  0x17   :  { %v65_v18 = vand.u32 31, %v63_v16  ;;  %v411_v20 = vshrl.u32 %v63_v16, 5 }
  0x18   :  { %229 = vmatpush.msra.mxu0 %v216_v10 }
  0x19   :  { %v66_v22 = vsub.s32 32, %v65_v18  ;;  %v68_v24 = vshll.u32 %v371_v23, %v65_v18  ;;  %v71_v26 = vshll.u32 %v372_v25, %v65_v18  ;;  %v74_v28 = vshll.u32 %v373_v27, %v65_v18 }
  0x1a   :  { %230 = vmatpush.msra.mxu0 %v215_v12  ;;  %v77_v30 = vshll.u32 %v374_v29, %v65_v18  ;;  %v80_v32 = vshll.u32 %v375_v31, %v65_v18  ;;  %vm83_vm1 = vcmp.lt.s32.totalorder %v411_v20, 1  ;;  %vm86_vm2 = vcmp.lt.s32.totalorder %v411_v20, 4 }
  0x1b   :  { %v69_v34 = vshrl.u32 %v372_v25, %v66_v22  ;;  %v72_v35 = vshrl.u32 %v373_v27, %v66_v22  ;;  %v75_v36 = vshrl.u32 %v374_v29, %v66_v22  ;;  %v78_v37 = vshrl.u32 %v375_v31, %v66_v22 }
  0x1c   :  { %231 = vmatpush.msra.mxu0 %v214_v15  ;;  %v81_v39 = vshrl.u32 %v376_v38, %v66_v22  ;;  %vm85_vm3 = vcmp.lt.s32.totalorder %v411_v20, 3  ;;  %vm84_vm4 = vcmp.lt.s32.totalorder %v411_v20, 2  ;;  %v67_v0 = vshrl.u32 %v371_v23, %v66_v22 }
  0x1d   :  { %v70_v42 = vor.u32 %v69_v34, %v68_v24  ;;  %v73_v43 = vor.u32 %v72_v35, %v71_v26  ;;  %v76_v44 = vor.u32 %v75_v36, %v74_v28  ;;  %v79_v45 = vor.u32 %v78_v37, %v77_v30 }
  0x1e   :  { %232 = vmatpush.msra.mxu0 %v213_v17  ;;  %v82_v46 = vor.u32 %v81_v39, %v80_v32  ;;  %v377_v18 = vmov 0  }
  0x1f   :  { %v91_v48 = vsel %vm83_vm1, %v70_v42, %v73_v43  ;;  %v95_v49 = vsel %vm83_vm1, %v73_v43, %v76_v44  ;;  %v92_v50 = vsel %vm86_vm2, %v79_v45, 920167782  ;;  %v87_v15 = vsel %vm83_vm1, %v67_v0, %v70_v42 }
  0x20   :  { %233 = vmatpush.msra.mxu0 %v212_v21  ;;  %v96_v51 = vsel %vm86_vm2, %v82_v46, 1326507024  ;;  %v93_v53 = vsel %vm85_vm3, %v76_v44, %v92_v50  ;;  %v88_v17 = vsel %vm86_vm2, %v76_v44, 2102212464  ;;  %vm194_vm1 = vweird.f32 %v405_v4 }
  0x21   :  { %v97_v54 = vsel %vm85_vm3, %v79_v45, %v96_v51  ;;  %v94_v57 = vsel %vm84_vm4, %v91_v48, %v93_v53  ;;  %v89_v28 = vsel %vm85_vm3, %v73_v43, %v88_v17 }
  0x22   :  { %234 = vmatpush.msra.mxu0 %v211_v33  ;;  %v98_v58 = vsel %vm84_vm4, %v95_v49, %v97_v54  ;;  %v124_v62 = vand.u32 65535, %v94_v57  ;;  %v125_v63 = vshrl.u32 %v94_v57, 16  ;;  %v90_v36 = vsel %vm84_vm4, %v87_v15, %v89_v28 }
  0x23   :  { %v102_v60 = vand.u32 65535, %v98_v58  ;;  %v103_v61 = vshrl.u32 %v98_v58, 16 }
  0x24   :  { %235 = vmatpush.msra.mxu0 %v210_v41  ;;  %v126_v5 = vmul.u32 %v124_v62, %v100_v55  ;;  %v127_v6 = vmul.u32 %v125_v63, %v100_v55  ;;  %v128_v7 = vmul.u32 %v124_v62, %v101_v56  ;;  %v129_v12 = vmul.u32 %v125_v63, %v101_v56 }
  0x25   :  { %v104_v1 = vmul.u32 %v102_v60, %v100_v55  ;;  %v105_v2 = vmul.u32 %v103_v61, %v100_v55  ;;  %v106_v3 = vmul.u32 %v102_v60, %v101_v56  ;;  %v107_v8 = vmul.u32 %v103_v61, %v101_v56 }
  0x26   :  { %236 = vmatpush.msra.mxu0 %v209_v47  ;;  %v130_v13 = vshll.u32 %v127_v6, 16  ;;  %v132_v14 = vshll.u32 %v128_v7, 16  ;;  %v131_v26 = vshrl.u32 %v127_v6, 16  ;;  %v133_v32 = vshrl.u32 %v128_v7, 16 }
  0x27   :  { %v108_v10 = vshll.u32 %v105_v2, 16  ;;  %v110_v11 = vshll.u32 %v106_v3, 16  ;;  %v109_v22 = vshrl.u32 %v105_v2, 16  ;;  %v111_v29 = vshrl.u32 %v106_v3, 16 }
  0x28   :  { %237 = vmatpush.msra.mxu0 %v208_v52  ;;  %vm134_vm6 = vc.u32 %v126_v5, %v130_v13  ;;  %v136_v21 = vadd.s32 %v130_v13, %v126_v5  ;;  %v144_v41 = vmul.u32 %v414_v40, %v90_v36 }
  0x29   :  { %vm112_vm5 = vc.u32 %v104_v1, %v108_v10  ;;  %v114_v16 = vadd.s32 %v108_v10, %v104_v1  ;;  %v135_v24 = vsel %vm134_vm6, 1, %v377_v18 }
  0x2a   :  { %238 = vmatpush.msra.mxu0 %v207_v59  ;;  %v113_v19 = vsel %vm112_vm5, 1, %v377_v18  ;;  %v137_v27 = vadd.s32 %v135_v24, %v129_v12  ;;  %vm138_vm8 = vc.u32 %v136_v21, %v132_v14  ;;  %v140_v35 = vadd.s32 %v136_v21, %v132_v14 }
  0x2b   :  { %v115_v23 = vadd.s32 %v113_v19, %v107_v8  ;;  %vm116_vm7 = vc.u32 %v114_v16, %v110_v11  ;;  %v139_v31 = vsel %vm138_vm8, 1, %v377_v18 }
  0x2c   :  { %v117_v25 = vsel %vm116_vm7, 1, %v377_v18  ;;  %v141_v33 = vadd.s32 %v139_v31, %v137_v27 }
  0x2d   :  { %v119_v30 = vadd.s32 %v117_v25, %v115_v23 }
  0x2e   :  { %v142_v37 = vadd.s32 %v141_v33, %v131_v26 }
  0x2f   :  { %v120_v34 = vadd.s32 %v119_v30, %v109_v22  ;;  %v288_v30 = vld [vmem:[%s459_s2] ss:$0 sm:$0xff] }
  0x30   :  { %v143_v39 = vadd.s32 %v142_v37, %v133_v32 }
  0x31   :  { %v121_v38 = vadd.s32 %v120_v34, %v111_v29 }
  0x32   :  { %v147_v42 = vadd.s32 1, %v143_v39 }
  0x33   :  { %vm146_vm9 = vc.u32 %v121_v38, %v140_v35  ;;  %v145_v20 = vadd.s32 %v140_v35, %v121_v38 }
  0x34   :  { %v148_v44 = vsel %vm146_vm9, %v147_v42, %v143_v39 }
  0x35   :  { %v149_v45 = vadd.s32 %v148_v44, %v144_v41 }
  0x37   :  { %v150_v43 = vadd.s32 536870912, %v149_v45 }
  0x39   :  { %v151_v46 = vshrl.u32 %v150_v43, 30 }
  0x3b   :  { %v152_v47 = vshll.u32 %v151_v46, 30  ;;  %v175_v0 = vsub.s32 4, %v151_v46 }
  0x3d   :  { %v153_v48 = vsub.s32 %v149_v45, %v152_v47  ;;  %v176_v3 = vsel %vm53_vm12, %v175_v0, %v151_v46 }
  0x3e   :  { %v178_v7 = vsel %vm52_vm13, 0, %v176_v3 }
  0x3f   :  { %vm154_vm10 = vcmp.lt.s32.totalorder %v153_v48, 0  ;;  %v155_v49 = vsub.s32 0, %v153_v48  ;;  %v195_v13 = vadd.s32 3, %v178_v7 }
  0x41   :  { %v156_v50 = vsel %vm154_vm10, %v155_v49, %v153_v48  ;;  %v196_v18 = vand.u32 3, %v195_v13 }
  0x42   :  { %v157_v51 = vclz %v156_v50 }
  0x43   :  { %vm201_vm14 = vcmp.eq.s32.totalorder %v196_v18, 2  ;;  %vm198_vm15 = vcmp.eq.s32.totalorder %v196_v18, 0  ;;  %vm197_vm0 = vcmp.lt.s32.totalorder %v196_v18, 2 }
  0x44   :  { %v274_v52 = vadd.s32 4294967294, %v157_v51 }
  0x46   :  { %vm275_vm11 = vcmp.lt.s32.totalorder %v274_v52, 0 }
  0x47   :  { %v160_v53 = vsel %vm275_vm11, 0, %v274_v52 }
  0x48   :  { %v161_v54 = vsub.s32 32, %v160_v53  ;;  %v162_v55 = vshll.u32 %v153_v48, %v160_v53  ;;  %v165_v56 = vsub.s32 4294967266, %v160_v53 }
  0x4a   :  { %v163_v40 = vshrl.u32 %v145_v20, %v161_v54  ;;  %v166_v57 = vadd.s32 127, %v165_v56 }
  0x4c   :  { %v164_v58 = vor.u32 %v163_v40, %v162_v55  ;;  %v167_v59 = vshll.u32 %v166_v57, 23 }
  0x4e   :  { %v168_v60 = vor.u32 4788187, %v167_v59  ;;  %v171_v61 = vcvt.s32.f32 %v164_v58 }
  0x50   :  { %v169_v62 = vand.u32 2147483647, %v168_v60 }
  0x52   :  { %v172_v63 = vmul.f32 %v171_v61, %v169_v62 }
  0x54   :  { %v173_v1 = vxor.u32 2147483648, %v172_v63 }
  0x56   :  { %v174_v2 = vsel %vm53_vm12, %v173_v1, %v172_v63 }
  0x57   :  { %v177_v5 = vsel %vm52_vm13, %v405_v4, %v174_v2 }
  0x58   :  { %v179_v6 = vmul.f32 %v177_v5, %v177_v5 }
  0x5a   :  { %v180_v8 = vmul.f32 -0.001358992, %v179_v6  ;;  %v187_v10 = vmul.f32 -0.00019511016, %v179_v6 }
  0x5c   :  { %v181_v11 = vadd.f32 0.041655596, %v180_v8  ;;  %v188_v12 = vadd.f32 0.008332121, %v187_v10 }
  0x5e   :  { %v182_v14 = vmul.f32 %v181_v11, %v179_v6  ;;  %v189_v15 = vmul.f32 %v188_v12, %v179_v6 }
  0x60   :  { %v183_v16 = vadd.f32 -0.4999988, %v182_v14  ;;  %v190_v17 = vadd.f32 -0.16666654, %v189_v15 }
  0x62   :  { %v184_v19 = vmul.f32 %v183_v16, %v179_v6  ;;  %v191_v21 = vmul.f32 %v190_v17, %v179_v6 }
  0x64   :  { %v185_v9 = vadd.f32 1.0, %v184_v19  ;;  %v192_v22 = vadd.f32 1.0, %v191_v21 }
  0x66   :  { %v193_v23 = vmul.f32 %v192_v22, %v177_v5  ;;  %v202_v24 = vxor.u32 2147483648, %v185_v9 }
  0x68   :  { %v199_v25 = vxor.u32 2147483648, %v193_v23  ;;  %v203_v26 = vsel %vm201_vm14, %v202_v24, %v193_v23 }
  0x6a   :  { %v200_v27 = vsel %vm198_vm15, %v185_v9, %v199_v25 }
  0x6b   :  { %v204_v28 = vsel %vm197_vm0, %v200_v27, %v203_v26 }
  0x6c   :  { %v205_v29 = vsel %vm194_vm1, nan, %v204_v28 }
  0x6d   :  { %239 = vmatmul.f32.vlgmr.msra.gmra.mxu0 %v205_v29 }
  0xea   :  { %v240_v31 = vpop.f32.mrf.mxu0 }
  0xeb   :  { %v253_v32 = vadd.f32 %v288_v30, %v240_v31 }
  0xed   :  { %254 = vst [vmem:[#allocation8] sm:$0xff] %v253_v32 }
  0xee   :  { %265 = dma.vmem_to_hbm [thread:$0]  %s261_s25, 128, %s263_s28, [#allocation5]  }
  0xef   :  { %365 = dma.done.wait [#allocation5], 128  }
  0xf0   :  { %366 = vsyncadd [#allocation5], 4294967168 }
  0xf1   :  { %270 = vsyncpa [#allocation4], 1 }
  0xf2   :  { %271 = vsyncpa [#allocation7], 1 }
  0xf3   :  { %272 = vsyncpa [#allocation5], 1 }

</bundles_post_ra>
